<compile_context>
chip_gen: v6e
topology: v6e:2x2x1
jax: 0.10.0
libtpu: 0.0.40
codegen_flags: <defaults>
</compile_context>

<pallas_src>
import jax
import jax.numpy as jnp
import numpy as np
from jax.experimental import pallas as pl
from jax.experimental.pallas import tpu as pltpu

D = 8  # feature dim fixed by the 8x8 identity basis in the module


def _round_up(v, m):
    return ((v + m - 1) // m) * m


def _largest_aligned_divisor(total, align, cap):
    """Largest d with d % align == 0, total % d == 0, d <= cap (total % align == 0)."""
    best = align
    d = align
    limit = min(cap, total)
    while d <= limit:
        if total % d == 0:
            best = d
        d += align
    return best


def allpoints_kernel(x_ref, xsq_ref, pts_ref, psq_ref, out_ref):
    # x_ref: (tm, D), xsq_ref: (tm, 1), pts_ref: (D, tn) holding -2*points^T,
    # psq_ref: (1, tn) holding ||points||^2, out_ref: (tm, tn).
    #
    # cdist via ||x||^2 + ||p||^2 - 2 x.p (both norms precomputed in wrapper).
    # NOTE: this expansion can lose precision for nearly coincident points
    # (same trade-off torch.cdist makes for large inputs).
    cross2 = jax.lax.dot_general(                      # (tm,8)@(8,tn) on MXU = -2 x.p
        x_ref[...], pts_ref[...],
        (((1,), (0,)), ((), ())),
        preferred_element_type=jnp.float32)            # (tm, tn)
    d2 = xsq_ref[...] + psq_ref[...] + cross2
    out_ref[...] = jnp.sqrt(jnp.maximum(d2, 0.0)).astype(out_ref.dtype)


def all_points(x, matrix, basis, *, tm_max=512, tn_max=2048, full_row_n=4096):
    """x: (B, M, D), matrix: (N, D), basis: (D, D) -> (B, M, N) distances."""
    B, M, Dx = x.shape
    N = matrix.shape[0]

    x = x.astype(jnp.float32)

    # ---- grid-invariant work done once in plain XLA, not per grid step ------
    points = jnp.dot(matrix.astype(jnp.float32),
                     basis.astype(jnp.float32))                  # (N, D)
    p_sq = jnp.sum(points * points, axis=-1)                     # (N,)
    pts2_t = jnp.transpose(-2.0 * points)                        # (D, N) stationary MXU operand

    # ---- tile selection ------------------------------------------------------
    Mp0 = _round_up(M, 8)
    Np0 = _round_up(N, 128)

    # tn: whole-row tile when N is modest (contiguous output slabs, j-axis = 1);
    # otherwise the largest multiple-of-128 divisor under the cap; pad only if
    # divisibility is hopeless.
    if Np0 <= full_row_n:
        tn, Np = Np0, Np0
    else:
        tn = _largest_aligned_divisor(Np0, 128, tn_max)
        if tn < 512:
            tn = tn_max
            Np = _round_up(Np0, tn)
        else:
            Np = Np0

    # tm: largest multiple-of-8 divisor of Mp under the cap; fall back to a
    # minimal-padding power-of-two tile only for badly divisible M.
    tm = _largest_aligned_divisor(Mp0, 8, tm_max)
    Mp = Mp0
    if tm < 64 and Mp0 > tm:
        best_padded, best_tm = None, None
        for cand in (512, 256, 128, 64):
            if cand > tm_max:
                continue
            padded = _round_up(Mp0, cand)
            if best_padded is None or padded < best_padded:
                best_padded, best_tm = padded, cand
        if best_tm is not None:
            Mp, tm = best_padded, best_tm

    # v7x has 2 TensorCores/chip: avoid a single-step grid so both stay busy.
    if B * (Mp // tm) * (Np // tn) == 1 and Mp >= 16:
        tm = _largest_aligned_divisor(Mp, 8, Mp // 2)

    # ---- pad (only when unavoidable) and precompute ||x||^2 -----------------
    x_p = jnp.pad(x, ((0, 0), (0, Mp - M), (0, 0))) if Mp != M else x
    x_sq = jnp.sum(x_p * x_p, axis=-1, keepdims=True)            # (B, Mp, 1)

    psq_row = p_sq.reshape(1, N)
    if Np != N:
        pts_p = jnp.pad(pts2_t, ((0, 0), (0, Np - N)))
        psq_p = jnp.pad(psq_row, ((0, 0), (0, Np - N)))
    else:
        pts_p, psq_p = pts2_t, psq_row

    out = pl.pallas_call(
        allpoints_kernel,
        out_shape=jax.ShapeDtypeStruct((B, Mp, Np), jnp.float32),
        grid_spec=pltpu.PrefetchScalarGridSpec(
            num_scalar_prefetch=0,
            grid=(B, Mp // tm, Np // tn),
            in_specs=[
                # x tile: batch dim squeezed -> kernel sees (tm, D)
                pl.BlockSpec((None, tm, Dx), lambda b, i, j: (b, i, 0)),
                # precomputed ||x||^2 tile: (tm, 1)
                pl.BlockSpec((None, tm, 1), lambda b, i, j: (b, i, 0)),
                # -2 * points^T tile: lane-dense stationary (D, tn), depends only on j
                pl.BlockSpec((Dx, tn), lambda b, i, j: (0, j)),
                # precomputed ||p||^2 tile: (1, tn)
                pl.BlockSpec((1, tn), lambda b, i, j: (0, j)),
            ],
            # output tile: batch dim squeezed -> kernel sees (tm, tn), lane-dense
            out_specs=pl.BlockSpec((None, tm, tn), lambda b, i, j: (b, i, j)),
        ),
        compiler_params=pltpu.CompilerParams(
            # No reduction axis -> everything parallel (lets v7x use both TCs).
            dimension_semantics=("parallel", "parallel", "parallel"),
            vmem_limit_bytes=48 * 1024 * 1024,
        ),
    )(x_p, x_sq, pts_p, psq_p)

    if Mp == M and Np == N:
        return out
    return out[:, :M, :N]


def reference(x, matrix, basis):
    points = matrix @ basis                                      # (N, D)
    diff = x[:, :, None, :] - points[None, None, :, :]           # (B, M, N, D)
    return jnp.sqrt(jnp.sum(diff * diff, axis=-1))


if __name__ == "__main__":
    B, M, N = 2, 16, 8

    key = jax.random.PRNGKey(0)
    k_x, k_p = jax.random.split(key)

    # Deterministic "init_points" parameter (shape (N, 8)) and input x.
    init_points = jax.random.normal(k_p, (N, D), dtype=jnp.float32)
    x = jax.random.normal(k_x, (B, M, D), dtype=jnp.float32)
    basis = jnp.eye(D, dtype=jnp.float32)                        # self._initial_basis

    out = jax.block_until_ready(all_points(x, init_points, basis))
    ref = reference(x, init_points, basis)

    np.testing.assert_allclose(np.asarray(out), np.asarray(ref),
                               rtol=1e-4, atol=1e-4)
    print("KERNEL_OK")
</pallas_src>

<mosaic_0001>
module attributes {stable_mosaic.version = 11 : i64} {
  func.func @allpoints_kernel(%arg0: i32, %arg1: i32, %arg2: i32, %arg3: memref<1x16x8xf32, #tpu.memory_space<vmem>>, %arg4: memref<1x16x1xf32, #tpu.memory_space<vmem>>, %arg5: memref<8x128xf32, #tpu.memory_space<vmem>>, %arg6: memref<1x128xf32, #tpu.memory_space<vmem>>, %arg7: memref<1x16x128xf32, #tpu.memory_space<vmem>>) attributes {dimension_semantics = [#tpu.dimension_semantics<parallel>, #tpu.dimension_semantics<parallel>, #tpu.dimension_semantics<parallel>], iteration_bounds = array<i64: 2, 1, 1>, scalar_prefetch = 0 : i64, scratch_operands = 0 : i64, tpu.core_type = #tpu.core_type<tc>, window_params = [{transform_indices = @transform_0, window_bounds = array<i64: 1, 16, 8>}, {transform_indices = @transform_1, window_bounds = array<i64: 1, 16, 1>}, {transform_indices = @transform_2, window_bounds = array<i64: 8, 128>}, {transform_indices = @transform_3, window_bounds = array<i64: 1, 128>}, {transform_indices = @transform_4, window_bounds = array<i64: 1, 16, 128>}]} {
    %c0 = arith.constant 0 : index
    %c0_0 = arith.constant 0 : index
    %c0_1 = arith.constant 0 : index
    %0 = vector.load %arg3[%c0, %c0_0, %c0_1] : memref<1x16x8xf32, #tpu.memory_space<vmem>>, vector<1x16x8xf32>
    %1 = vector.shape_cast %0 : vector<1x16x8xf32> to vector<16x8xf32>
    %c0_2 = arith.constant 0 : index
    %c0_3 = arith.constant 0 : index
    %2 = vector.load %arg5[%c0_2, %c0_3] : memref<8x128xf32, #tpu.memory_space<vmem>>, vector<8x128xf32>
    %cst = arith.constant dense<0.000000e+00> : vector<16x128xf32>
    %3 = tpu.matmul %1, %2, %cst {dimension_numbers = #tpu.dot_dimension_numbers<[1], [0], [0], [1], [0, 0, 1, 1], [], []>} : vector<16x8xf32>, vector<8x128xf32>, vector<16x128xf32> -> vector<16x128xf32>
    %c0_4 = arith.constant 0 : index
    %c0_5 = arith.constant 0 : index
    %c0_6 = arith.constant 0 : index
    %4 = vector.load %arg4[%c0_4, %c0_5, %c0_6] : memref<1x16x1xf32, #tpu.memory_space<vmem>>, vector<1x16x1xf32>
    %5 = vector.shape_cast %4 : vector<1x16x1xf32> to vector<16x1xf32>
    %c0_7 = arith.constant 0 : index
    %c0_8 = arith.constant 0 : index
    %6 = vector.load %arg6[%c0_7, %c0_8] : memref<1x128xf32, #tpu.memory_space<vmem>>, vector<1x128xf32>
    %7 = vector.broadcast %5 : vector<16x1xf32> to vector<16x128xf32>
    %8 = vector.broadcast %6 : vector<1x128xf32> to vector<16x128xf32>
    %9 = arith.addf %7, %8 : vector<16x128xf32>
    %10 = arith.addf %9, %3 : vector<16x128xf32>
    %cst_9 = arith.constant 0.000000e+00 : f32
    %11 = vector.broadcast %cst_9 : f32 to vector<16x128xf32>
    %12 = arith.maximumf %10, %11 : vector<16x128xf32>
    %13 = math.sqrt %12 : vector<16x128xf32>
    %c0_10 = arith.constant 0 : index
    %c0_11 = arith.constant 0 : index
    %c0_12 = arith.constant 0 : index
    %14 = vector.load %arg7[%c0_10, %c0_11, %c0_12] : memref<1x16x128xf32, #tpu.memory_space<vmem>>, vector<1x16x128xf32>
    %15 = vector.shape_cast %14 : vector<1x16x128xf32> to vector<16x128xf32>
    %16 = vector.shape_cast %13 : vector<16x128xf32> to vector<1x16x128xf32>
    tpu.vector_store %arg7[%c0_10, %c0_11, %c0_12], %16 {strides = array<i32>} : memref<1x16x128xf32, #tpu.memory_space<vmem>>, vector<1x16x128xf32>,
    return
  }
  func.func @transform_0(%arg0: i32, %arg1: i32, %arg2: i32) -> (i32, i32, i32) {
    %c0_i32 = arith.constant 0 : i32
    %c0_i32_0 = arith.constant 0 : i32
    return %arg0, %arg1, %c0_i32 : i32, i32, i32
  }
  func.func @transform_1(%arg0: i32, %arg1: i32, %arg2: i32) -> (i32, i32, i32) {
    %c0_i32 = arith.constant 0 : i32
    %c0_i32_0 = arith.constant 0 : i32
    return %arg0, %arg1, %c0_i32 : i32, i32, i32
  }
  func.func @transform_2(%arg0: i32, %arg1: i32, %arg2: i32) -> (i32, i32) {
    %c0_i32 = arith.constant 0 : i32
    %c0_i32_0 = arith.constant 0 : i32
    return %c0_i32, %arg2 : i32, i32
  }
  func.func @transform_3(%arg0: i32, %arg1: i32, %arg2: i32) -> (i32, i32) {
    %c0_i32 = arith.constant 0 : i32
    %c0_i32_0 = arith.constant 0 : i32
    return %c0_i32, %arg2 : i32, i32
  }
  func.func @transform_4(%arg0: i32, %arg1: i32, %arg2: i32) -> (i32, i32, i32) {
    %c0_i32 = arith.constant 0 : i32
    return %arg0, %arg1, %arg2 : i32, i32, i32
  }
}

</mosaic_0001>

<bundles_post_ra>
// kernel: tpu_custom_call.1
= control target key start
LH: loop header
LB: loop body
LE: loop exit
PB: predicated region body
PF: predicated region fallthrough
CT: control target
= control target key end

     0   :  { %9 = vsyncpa [#allocation3], 0  ;;  %s898_s0 = inlined_call_operand.vmem [shape: f32[2,16,8], index: 0, kind: input, shape index: {}]   ;;  %s899_s1 = inlined_call_operand.vmem [shape: f32[2,16,1], index: 1, kind: input, shape index: {}]   ;;  %s900_s2 = inlined_call_operand.vmem [shape: f32[8,128], index: 2, kind: input, shape index: {}]   ;;  %s901_s3 = inlined_call_operand.vmem [shape: f32[1,128], index: 3, kind: input, shape index: {}]   ;;  %s902_s4 = inlined_call_operand.hbm [shape: f32[2,16,128], index: 4, kind: output, shape index: {}]  }
   0x1   :  { %11 = vsyncpa [#allocation3 + $0x1], 0  ;;  %s775_s15 = smov 0   ;;  %s777_s16 = smov 0  }
   0x2   :  { %s779_s17 = smov 0   ;;  %s781_s18 = smov 0  }
   0x3   :  { %s783_s19 = smov 0   ;;  %s785_s20 = smov 0  }
   0x4 LB: > { %s574_s21 = sadd.s32 4294967295, %s744_s20   ;;  %s575_s22 = sadd.s32 4294967294, %s744_s20   ;;  %s744_s20 = sphi %s785_s20, %s17_s20   ;;  %s740_s19 = sphi %s783_s19, %s909_s19   ;;  %s736_s18 = sphi %s781_s18, %s908_s18   ;;  %s732_s17 = sphi %s779_s17, %s907_s17   ;;  %s728_s16 = sphi %s777_s16, %s906_s16   ;;  %s724_s15 = sphi %s775_s15, %s905_s15  }
   0x5   : > { %s36_s23 = sadd.s32 1, %s740_s19  ;;  %s155_s24 = sadd.s32 1, %s732_s17 }
   0x6   : > { %p38_p0 = scmp.ge.s32.totalorder %s36_s23, 2  ;;  %p165_p1 = scmp.ne.s32.totalorder %s732_s17, %s728_s16 }
   0x7   : > { %p166_p2 = scmp.eq.s32.totalorder %s574_s21, 1  ;;  %p171_p3 = scmp.ne.s32.totalorder %s728_s16, %s724_s15 }
   0x8   : > { %s911_s23 = smov (%p38_p0, %s36_s23), 0  ;;  %p172_p5 = scmp.eq.s32.totalorder %s575_s22, 1 }
   0x9   : > { %p815_p4 = por %p166_p2, %p165_p1  ;;  %s148_s26 = ssub.s32 %s740_s19, %s911_s23 }
   0xa   : > { %p580_p6 = scmp.ge.s32.totalorder %s744_s20, 1  ;;  %p153_p7 = scmp.eq.s32.totalorder %s148_s26, 0 }
   0xb   : > { %p822_p8 = por %p172_p5, %p171_p3  ;;  %p229_p9 = scmp.lt.s32.totalorder %s744_s20, 3 }
   0xc   : > { %s828_s28 = scalar_select %p153_p7, %s732_s17, %s155_s24  }
   0xd   : > { %p230_p10 = pnand %p580_p6, %p229_p9 }
   0xe   : > { %p276_p11 = scmp.lt.s32.totalorder (!%p230_p10), %s736_s18, 1  ;;  %s272_s21 = sand.u32 (!%p230_p10), 1, %s728_s16  }
   0xf   : > { %233 = sbr.rel (%p230_p10) target bundleno = 257 (0x101), region = 36  ;;  %s581_s22 = sshll.u32 (!%p230_p10), %s272_s21, 4 }
  0x10   : > { %s596_s24 = sshll.u32 (!%p230_p10), %s736_s18, 8  ;;  %s274_s26 = scalar_lea.vmem (!%p230_p10), [#allocation2], %s581_s22 }
  0x11   : > { %s446_s29 = sshll.u32 (!%p230_p10), %s274_s26, 4  ;;  %s747_s8 = smov (!%p230_p10), [#allocation2]   ;;  %s851_s29 = int_to_ptr.vmem [resolvable:$true] %s446_s29 }
  0x12   : > { %s668_s7 = scalar_lea.vmem (!%p230_p10), %s851_s29, 256 }
  0x13   : > { %p669_p12 = scmp.ne.s32.totalorder (!%p230_p10), %s851_s29, %s668_s7 }
  0x14   : > { %v305_v0 = vld [vmem:[%s900_s2] sm:$0xff]  ;;  %v746_v1 = vmov 0   ;;  %s277_s5 = scalar_select %p276_p11, %s736_s18, 1  ;;  %vm306_vm0 = vcmask 64512  }
  0x15   : > { %600 = vmatprep.subr.mxu0 %v305_v0  ;;  %663 = vset.pattern.permute.xlu0 %v746_v1  ;;  %v588_v7 = vld [vmem:[%s901_s3] ss:$0 sm:$0xff]  ;;  %s853_s18 = scalar_lea.sflag [#allocation3], %s272_s21  ;;  %p670_p13 = pnand %p669_p12, %p815_p4 }
  0x16   : > { %601 = vmatpush3.msra.mxu0 %v305_v0  ;;  %s594_s6 = sshll.u32 %s277_s5, 4 }
  0x17   : > { %s283_s9 = scalar_lea.vmem %s898_s0, %s594_s6  ;;  %s293_s12 = scalar_lea.vmem %s899_s1, %s594_s6 }
  0x18   : > { %v303_v2 = vld [vmem:[%s283_s9] sm:$0xff]  ;;  %v304_v3 = vld [vmem:[%s283_s9 + $0x8] sm:$0xff]  ;;  %s849_s6 = scalar_lea.hbm %s902_s4, %s596_s24  ;;  %p671_p0 = pneg %p670_p13 }
  0x19   : > { %v388_v4 = vld [vmem:[%s293_s12] sm:$0xff]  ;;  %602 = vmatprep.mubr.msk.f32.mxu0 %vm306_vm0, %v303_v2  ;;  %v389_v5 = vld [vmem:[%s293_s12 + $0x8] sm:$0xff]  ;;  %s672_s9 = sshll.u32 %s747_s8, 4  ;;  %s673_s9 = int_to_ptr.vmem [resolvable:$false] %s672_s9 }
  0x1a   : > { %393 = vperm.xlu0 %663, %v388_v4   ;;  %603 = vmatmul.mubr.msk.f32.vlgmr.msra.gmra.mxu0 %vm306_vm0, %v304_v3  ;;  %s674_s10 = scalar_lea.vmem %s673_s9, 512  ;;  %p675_p1 = scmp.lt.s32.totalorder %s851_s29, %s673_s9 }
  0x1b   : > { %p676_p2 = scmp.lt.s32.totalorder %s674_s10, %s668_s7 }
  0x1d   : > { %p677_p3 = por %p676_p2, %p675_p1 }
  0x1e   : > { %398 = vperm.xlu0 %663, %v389_v5  }
  0x1f   : > { %p678_p5 = pnand %p677_p3, %p671_p0 }
  0x95   : > { %v394_v6 = vpop.permute.xlu0 %393 }
  0x96   : > { %v407_v11 = vadd.f32 %v588_v7, %v394_v6 }
  0x99   : > { %v399_v8 = vpop.permute.xlu0 %398 }
  0x9a   : > { %v408_v9 = vadd.f32 %v588_v7, %v399_v8 }
  0xda   : > { %v604_v10 = vpop.f32.mrf.mxu0 }
  0xdb   : > { %v410_v12 = vadd.f32 %v604_v10, %v408_v9 }
  0xdc   : > { %v379_v13 = vpop.f32.mrf.mxu0 }
  0xdd   : > { %v412_v14 = vmax.f32 %v410_v12, 0.0  ;;  %v409_v15 = vadd.f32 %v407_v11, %v379_v13 }
  0xdf   : > { %664 = vrsqrt.f32 %v412_v14  ;;  %v411_v16 = vmax.f32 %v409_v15, 0.0  ;;  %vm422_vm1 = vcmp.eq.f32.partialorder %v412_v14, inf  ;;  %v425_v20 = vand.u32 2147483648, %v412_v14 }
  0xe0   : > { %vm424_vm2 = vcmp.eq.f32.partialorder %v412_v14, 0.0 }
  0xe1   : > { %666 = vrsqrt.f32 %v411_v16  ;;  %vm415_vm3 = vcmp.eq.f32.partialorder %v411_v16, inf  ;;  %v418_v23 = vand.u32 2147483648, %v411_v16  ;;  %vm417_vm4 = vcmp.eq.f32.partialorder %v411_v16, 0.0 }
  0xec   : > { %v665_v17 = vpop.eup %664 }
  0xed   : > { %v421_v18 = vmul.f32 %v665_v17, %v412_v14 }
  0xee   : > { %v667_v19 = vpop.eup %666 }
  0xef   : > { %v414_v21 = vmul.f32 %v667_v19, %v411_v16  ;;  %v423_v22 = vsel %vm422_vm1, %v412_v14, %v421_v18 }
  0xf0   : > { %v426_v24 = vsel %vm424_vm2, %v425_v20, %v423_v22 }
  0xf1   : > { %v416_v25 = vsel %vm415_vm3, %v411_v16, %v414_v21  ;;  %428 = vst [vmem:[%s274_s26 + $0x8] sm:$0xff] %v426_v24 }
  0xf2   : > { %v419_v26 = vsel %vm417_vm4, %v418_v23, %v416_v25 }
  0xf3   : > { %427 = vst [vmem:[%s274_s26] sm:$0xff] %v419_v26 }
  0xf4   : > { %681 = shalt.err (!%p678_p5)
}
  0xf5   : > { %s682_s11 = scalar_lea.hbm %s849_s6, 256  ;;  %s686_s14 = scalar_lea.hbm %s902_s4, 512 }
  0xf6   : > { %p683_p6 = scmp.ne.s32.totalorder %s849_s6, %s682_s11  ;;  %p687_p10 = scmp.lt.s32.totalorder %s849_s6, %s902_s4 }
  0xf7   : > { %p688_p11 = scmp.lt.s32.totalorder %s686_s14, %s682_s11 }
  0xf8   : > { %p684_p7 = pnand %p683_p6, %p815_p4 }
  0xf9   : > { %p689_p12 = por %p688_p11, %p687_p10 }
  0xfa   : > { %p685_p9 = pneg %p684_p7 }
  0xfc   : > { %p690_p13 = pnand %p689_p12, %p685_p9 }
  0xfe   : > { %693 = shalt.err (!%p690_p13)
}
  0xff   : > { %s748_s24 = smov 128   ;;  %s749_s26 = smov 8  }
 0x100   : > { %605 = dma.vmem_to_hbm [thread:$0]  (%p815_p4), %s851_s29, 256, %s849_s6, %s853_s18, %s748_s24, %s748_s24, %s749_s26  }
 0x101 PF: > { %p611_p0 = scmp.ge.s32.totalorder %s744_s20, 2  ;;  %s461_s30 = sand.u32 1, %s724_s15  }
 0x102   : > { %s462_s5 = scalar_lea.sflag [#allocation3], %s461_s30 }
 0x103   : > { %p608_p1 = pnand %p611_p0, %p822_p8 }
 0x105   : > { %p609_p2 = pneg %p608_p1 }
 0x107   : > { %719 = dma.done.wait (%p609_p2), %s462_s5, 256  }
 0x108   : > { %721 = vsyncadd (%p609_p2), %s462_s5, 4294967040  ;;  %s17_s20 = sadd.s32 1, %s744_s20   ;;  %s905_s15 = smov %s728_s16 }
 0x109   : > { %p14_p3 = scmp.ge.s32.totalorder %s17_s20, 4   ;;  %s906_s16 = smov %s732_s17 }
 0x10a   : > { %s907_s17 = smov %s828_s28  ;;  %s908_s18 = smov %s740_s19 }
 0x10b   : > { %s909_s19 = smov %s911_s23  ;;  %16 = sbr.rel (!%p14_p3) target bundleno = 4 (0x4), region = 80 }
 0x110   :  { %467 = vsyncpa [#allocation3], 1 }
 0x111   :  { %469 = vsyncpa [#allocation3 + $0x1], 1 }

</bundles_post_ra>
